<compile_context>
chip_gen: v5e
topology: v5e:2x2
jax: 0.10.0
libtpu: 0.0.40
codegen_flags: <defaults>
</compile_context>

<pallas_src>
import jax
import jax.numpy as jnp
from jax import lax
from jax.experimental import pallas as pl
from jax.experimental.pallas import tpu as pltpu

D_IN, D_FEAT, D_H1, D_H2, D_OUT = 32, 80, 50, 15, 1
D_H1P = 56  # 50 padded up to a multiple of 8 (f32 sublane tile)


def _semiadnet_kernel(x_ref, wfeT_ref, bfeT_ref, w3T_ref, b3T_ref,
                      w45T_ref, b45_ref, out_ref):
    # x: (row_blk, D_IN) -- natural layout straight from HBM.
    x = x_ref[...].astype(jnp.bfloat16)

    # Feature extractor: relu(Wfe @ x^T + bfe) -> (D_FEAT, row_blk).
    # Contract D_IN (last dim of both operands); batch lands on lanes.
    featT = lax.dot_general(
        wfeT_ref[...], x, (((1,), (1,)), ((), ())),
        preferred_element_type=jnp.float32)
    featT = jnp.maximum(featT + bfeT_ref[...], 0.0).astype(jnp.bfloat16)

    # layer3 (80 -> 50, padded to 56) + ReLU -> (D_H1P, row_blk).
    hT = jnp.dot(w3T_ref[...], featT, preferred_element_type=jnp.float32)
    hT = jnp.maximum(hT + b3T_ref[...], 0.0).astype(jnp.bfloat16)

    # Fused layer4+layer5 (50 -> 15 -> 1, no activation in between)
    # -> (1, row_blk): fully lane-dense output store.
    sT = jnp.dot(w45T_ref[...], hT, preferred_element_type=jnp.float32)
    out_ref[...] = (sT + b45_ref[...]).astype(out_ref.dtype)


def init_params(key):
    """Raw (PyTorch-layout-equivalent) parameters, stored (in, out)."""
    ks = jax.random.split(key, 8)
    scale = 0.05
    wfe = scale * jax.random.normal(ks[0], (D_IN, D_FEAT), jnp.float32)
    bfe = scale * jax.random.normal(ks[1], (1, D_FEAT), jnp.float32)
    w3 = scale * jax.random.normal(ks[2], (D_FEAT, D_H1), jnp.float32)
    b3 = scale * jax.random.normal(ks[3], (1, D_H1), jnp.float32)
    w4 = scale * jax.random.normal(ks[4], (D_H1, D_H2), jnp.float32)
    b4 = scale * jax.random.normal(ks[5], (1, D_H2), jnp.float32)
    w5 = scale * jax.random.normal(ks[6], (D_H2, D_OUT), jnp.float32)
    b5 = scale * jax.random.normal(ks[7], (1, D_OUT), jnp.float32)
    return (wfe, bfe, w3, b3, w4, b4, w5, b5)


def _pack_params(params):
    """Transpose weights, lightly pad D_H1 (50 -> 56), fuse layer4/layer5,
    and cast MXU operands to bf16 (biases stay f32 for f32 accumulation)."""
    wfe, bfe, w3, b3, w4, b4, w5, b5 = params
    w45 = w4 @ w5                                  # (D_H1, 1)
    b45 = (b4 @ w5 + b5).astype(jnp.float32)       # (1, 1)

    wfeT = wfe.T.astype(jnp.bfloat16)                                   # (80, 32)
    bfeT = bfe.T.astype(jnp.float32)                                    # (80, 1)
    w3T = (jnp.zeros((D_H1P, D_FEAT), jnp.bfloat16)
           .at[:D_H1, :].set(w3.T.astype(jnp.bfloat16)))                # (56, 80)
    b3T = jnp.zeros((D_H1P, 1), jnp.float32).at[:D_H1, :].set(b3.T)     # (56, 1)
    w45T = (jnp.zeros((1, D_H1P), jnp.bfloat16)
            .at[:, :D_H1].set(w45.T.astype(jnp.bfloat16)))              # (1, 56)
    return wfeT, bfeT, w3T, b3T, w45T, b45


def _choose_row_blk(n, requested=8192):
    """Multiple of 128; big enough to amortise grid-step overhead, but capped
    so that large batches get >= 2 grid steps (keeps both v7x TCs busy)."""
    requested = max(128, (int(requested) // 128) * 128)
    half = -(-int(n) // 2)                     # ceil(n / 2)
    half = max(128, -(-half // 128) * 128)     # round up to multiple of 128
    return min(requested, half)


def semiadnet_forward(data, params, n_scales=1, row_blk=8192):
    """Mirrors _SemiADNet_.forward: per-sample MLP scoring, returns [N, 1].

    In the reference, every scale recomputes identical scores and only the
    last survives (the pyramid/topk aggregation is commented out), so the
    kernel is launched exactly once regardless of n_scales.
    """
    if n_scales == 0:
        raise ValueError
    N, d_in = data.shape
    assert d_in == D_IN

    blk = _choose_row_blk(N, row_blk)
    grid = pl.cdiv(N, blk)

    wfeT, bfeT, w3T, b3T, w45T, b45 = _pack_params(params)

    def full(shape):
        # Constant index_map -> weights stay resident in VMEM across steps.
        return pl.BlockSpec(shape, lambda i: (0, 0))

    scores_t = pl.pallas_call(
        _semiadnet_kernel,
        out_shape=jax.ShapeDtypeStruct((1, N), jnp.float32),
        grid=(grid,),
        in_specs=[
            pl.BlockSpec((blk, D_IN), lambda i: (i, 0)),   # data, natural layout
            full(wfeT.shape), full(bfeT.shape),            # feature extractor
            full(w3T.shape), full(b3T.shape),              # layer3
            full(w45T.shape), full(b45.shape),             # fused layer4+5
        ],
        out_specs=pl.BlockSpec((1, blk), lambda i: (0, i)),
        compiler_params=pltpu.CompilerParams(
            dimension_semantics=("parallel",)),
    )(data.astype(jnp.float32), wfeT, bfeT, w3T, b3T, w45T, b45)

    return scores_t[0, :].reshape(-1, 1)


def _reference(data, params):
    wfe, bfe, w3, b3, w4, b4, w5, b5 = params
    feat = jnp.maximum(data @ wfe + bfe, 0.0)
    h = jnp.maximum(feat @ w3 + b3, 0.0)
    h = h @ w4 + b4
    s = h @ w5 + b5
    return s.reshape(-1, 1)


if __name__ == "__main__":
    key = jax.random.PRNGKey(0)
    kd, kp = jax.random.split(key)
    N = 200  # exercises one full (128) block and one partial (72) block
    data = jax.random.normal(kd, (N, D_IN), jnp.float32)
    params = init_params(kp)

    out = semiadnet_forward(data, params, n_scales=1)
    out = jax.block_until_ready(out)

    ref = _reference(data, params)
    assert out.shape == (N, 1)
    # bf16 MXU operands with f32 accumulation -> relaxed tolerance vs f32 ref.
    assert jnp.allclose(out, ref, atol=2e-2, rtol=2e-2)
    print("KERNEL_OK")
</pallas_src>

<mosaic_0001>
module attributes {stable_mosaic.version = 11 : i64} {
  func.func @_semiadnet_kernel(%arg0: i32, %arg1: memref<128x32xf32, #tpu.memory_space<vmem>>, %arg2: memref<80x32xbf16, #tpu.memory_space<vmem>>, %arg3: memref<80x1xf32, #tpu.memory_space<vmem>>, %arg4: memref<56x80xbf16, #tpu.memory_space<vmem>>, %arg5: memref<56x1xf32, #tpu.memory_space<vmem>>, %arg6: memref<1x56xbf16, #tpu.memory_space<vmem>>, %arg7: memref<1x1xf32, #tpu.memory_space<vmem>>, %arg8: memref<1x128xf32, #tpu.memory_space<vmem>>) attributes {dimension_semantics = [#tpu.dimension_semantics<parallel>], iteration_bounds = array<i64: 2>, scalar_prefetch = 0 : i64, scratch_operands = 0 : i64, tpu.core_type = #tpu.core_type<tc>, window_params = [{transform_indices = @transform_0, window_bounds = array<i64: 128, 32>}, {pipeline_mode = #tpu.pipeline_mode<synchronous>, transform_indices = @transform_1, window_bounds = array<i64: 80, 32>}, {pipeline_mode = #tpu.pipeline_mode<synchronous>, transform_indices = @transform_2, window_bounds = array<i64: 80, 1>}, {pipeline_mode = #tpu.pipeline_mode<synchronous>, transform_indices = @transform_3, window_bounds = array<i64: 56, 80>}, {pipeline_mode = #tpu.pipeline_mode<synchronous>, transform_indices = @transform_4, window_bounds = array<i64: 56, 1>}, {pipeline_mode = #tpu.pipeline_mode<synchronous>, transform_indices = @transform_5, window_bounds = array<i64: 1, 56>}, {pipeline_mode = #tpu.pipeline_mode<synchronous>, transform_indices = @transform_6, window_bounds = array<i64: 1, 1>}, {transform_indices = @transform_7, window_bounds = array<i64: 1, 128>}]} {
    %c0 = arith.constant 0 : index
    %c0_0 = arith.constant 0 : index
    %0 = vector.load %arg1[%c0, %c0_0] : memref<128x32xf32, #tpu.memory_space<vmem>>, vector<128x32xf32>
    %1 = arith.truncf %0 : vector<128x32xf32> to vector<128x32xbf16>
    %c0_1 = arith.constant 0 : index
    %c0_2 = arith.constant 0 : index
    %2 = vector.load %arg2[%c0_1, %c0_2] : memref<80x32xbf16, #tpu.memory_space<vmem>>, vector<80x32xbf16>
    %cst = arith.constant dense<0.000000e+00> : vector<80x128xf32>
    %3 = tpu.matmul %2, %1, %cst {dimension_numbers = #tpu.dot_dimension_numbers<[1], [1], [0], [0], [0, 0, 1, 0], [], []>} : vector<80x32xbf16>, vector<128x32xbf16>, vector<80x128xf32> -> vector<80x128xf32>
    %c0_3 = arith.constant 0 : index
    %c0_4 = arith.constant 0 : index
    %4 = vector.load %arg3[%c0_3, %c0_4] : memref<80x1xf32, #tpu.memory_space<vmem>>, vector<80x1xf32>
    %5 = vector.broadcast %4 : vector<80x1xf32> to vector<80x128xf32>
    %6 = arith.addf %3, %5 : vector<80x128xf32>
    %cst_5 = arith.constant 0.000000e+00 : f32
    %7 = vector.broadcast %cst_5 : f32 to vector<80x128xf32>
    %8 = arith.maximumf %6, %7 : vector<80x128xf32>
    %9 = arith.truncf %8 : vector<80x128xf32> to vector<80x128xbf16>
    %c0_6 = arith.constant 0 : index
    %c0_7 = arith.constant 0 : index
    %10 = vector.load %arg4[%c0_6, %c0_7] : memref<56x80xbf16, #tpu.memory_space<vmem>>, vector<56x80xbf16>
    %cst_8 = arith.constant dense<0.000000e+00> : vector<56x128xf32>
    %11 = tpu.matmul %10, %9, %cst_8 {dimension_numbers = #tpu.dot_dimension_numbers<[1], [0], [0], [1], [0, 0, 1, 1], [], []>} : vector<56x80xbf16>, vector<80x128xbf16>, vector<56x128xf32> -> vector<56x128xf32>
    %c0_9 = arith.constant 0 : index
    %c0_10 = arith.constant 0 : index
    %12 = vector.load %arg5[%c0_9, %c0_10] : memref<56x1xf32, #tpu.memory_space<vmem>>, vector<56x1xf32>
    %13 = vector.broadcast %12 : vector<56x1xf32> to vector<56x128xf32>
    %14 = arith.addf %11, %13 : vector<56x128xf32>
    %cst_11 = arith.constant 0.000000e+00 : f32
    %15 = vector.broadcast %cst_11 : f32 to vector<56x128xf32>
    %16 = arith.maximumf %14, %15 : vector<56x128xf32>
    %17 = arith.truncf %16 : vector<56x128xf32> to vector<56x128xbf16>
    %c0_12 = arith.constant 0 : index
    %c0_13 = arith.constant 0 : index
    %18 = vector.load %arg6[%c0_12, %c0_13] : memref<1x56xbf16, #tpu.memory_space<vmem>>, vector<1x56xbf16>
    %cst_14 = arith.constant dense<0.000000e+00> : vector<1x128xf32>
    %19 = tpu.matmul %18, %17, %cst_14 {dimension_numbers = #tpu.dot_dimension_numbers<[1], [0], [0], [1], [0, 0, 1, 1], [], []>} : vector<1x56xbf16>, vector<56x128xbf16>, vector<1x128xf32> -> vector<1x128xf32>
    %c0_15 = arith.constant 0 : index
    %c0_16 = arith.constant 0 : index
    %20 = vector.load %arg7[%c0_15, %c0_16] : memref<1x1xf32, #tpu.memory_space<vmem>>, vector<1x1xf32>
    %21 = vector.broadcast %20 : vector<1x1xf32> to vector<1x128xf32>
    %22 = arith.addf %19, %21 : vector<1x128xf32>
    %c0_17 = arith.constant 0 : index
    %c0_18 = arith.constant 0 : index
    %23 = vector.load %arg8[%c0_17, %c0_18] : memref<1x128xf32, #tpu.memory_space<vmem>>, vector<1x128xf32>
    tpu.vector_store %arg8[%c0_17, %c0_18], %22 {strides = array<i32>} : memref<1x128xf32, #tpu.memory_space<vmem>>, vector<1x128xf32>,
    return
  }
  func.func @transform_0(%arg0: i32) -> (i32, i32) {
    %c0_i32 = arith.constant 0 : i32
    %c0_i32_0 = arith.constant 0 : i32
    return %arg0, %c0_i32 : i32, i32
  }
  func.func @transform_1(%arg0: i32) -> (i32, i32) {
    %c0_i32 = arith.constant 0 : i32
    %c0_i32_0 = arith.constant 0 : i32
    %c0_i32_1 = arith.constant 0 : i32
    return %c0_i32, %c0_i32_0 : i32, i32
  }
  func.func @transform_2(%arg0: i32) -> (i32, i32) {
    %c0_i32 = arith.constant 0 : i32
    %c0_i32_0 = arith.constant 0 : i32
    %c0_i32_1 = arith.constant 0 : i32
    return %c0_i32, %c0_i32_0 : i32, i32
  }
  func.func @transform_3(%arg0: i32) -> (i32, i32) {
    %c0_i32 = arith.constant 0 : i32
    %c0_i32_0 = arith.constant 0 : i32
    %c0_i32_1 = arith.constant 0 : i32
    return %c0_i32, %c0_i32_0 : i32, i32
  }
  func.func @transform_4(%arg0: i32) -> (i32, i32) {
    %c0_i32 = arith.constant 0 : i32
    %c0_i32_0 = arith.constant 0 : i32
    %c0_i32_1 = arith.constant 0 : i32
    return %c0_i32, %c0_i32_0 : i32, i32
  }
  func.func @transform_5(%arg0: i32) -> (i32, i32) {
    %c0_i32 = arith.constant 0 : i32
    %c0_i32_0 = arith.constant 0 : i32
    %c0_i32_1 = arith.constant 0 : i32
    return %c0_i32, %c0_i32_0 : i32, i32
  }
  func.func @transform_6(%arg0: i32) -> (i32, i32) {
    %c0_i32 = arith.constant 0 : i32
    %c0_i32_0 = arith.constant 0 : i32
    %c0_i32_1 = arith.constant 0 : i32
    return %c0_i32, %c0_i32_0 : i32, i32
  }
  func.func @transform_7(%arg0: i32) -> (i32, i32) {
    %c0_i32 = arith.constant 0 : i32
    %c0_i32_0 = arith.constant 0 : i32
    return %c0_i32, %arg0 : i32, i32
  }
}

</mosaic_0001>

<bundles_post_ra>
// kernel: tpu_custom_call.1
= control target key start
LH: loop header
LB: loop body
LE: loop exit
PB: predicated region body
PF: predicated region fallthrough
CT: control target
= control target key end

     0   :  { %s1147_s0 = inlined_call_operand.vmem [shape: f32[200,32], index: 0, kind: input, shape index: {}]   ;;  %s1148_s1 = inlined_call_operand.vmem [shape: bf16[80,32], index: 1, kind: input, shape index: {}]   ;;  %s1149_s2 = inlined_call_operand.vmem [shape: f32[80,1], index: 2, kind: input, shape index: {}]   ;;  %s1150_s3 = inlined_call_operand.vmem [shape: bf16[56,80], index: 3, kind: input, shape index: {}]   ;;  %s1151_s4 = inlined_call_operand.vmem [shape: f32[56,1], index: 4, kind: input, shape index: {}]   ;;  %s1152_s5 = inlined_call_operand.vmem [shape: bf16[1,56], index: 5, kind: input, shape index: {}]   ;;  %s1153_s6 = inlined_call_operand.<no memory space> [shape: f32[1,1], index: 6, kind: input, shape index: {}]   ;;  %s1154_s7 = inlined_call_operand.hbm [shape: f32[1,200], index: 7, kind: output, shape index: {}]  }
   0x1   :  { %v12_v0 = vstv %s1153_s6 }
   0x2   :  { %13 = vst [vmem:[#allocation2] sm:$0x1] %v12_v0 }
   0x3   :  { %14 = vsyncpa [#allocation4], 0 }
   0x4   :  { %16 = vsyncpa [#allocation4 + $0x1], 0  ;;  %s951_s26 = smov 0   ;;  %s953_s27 = smov 0  }
   0x5   :  { %s955_s28 = smov 0   ;;  %s957_s29 = smov 0  }
   0x6 LB: > { %s972_s6 = sadd.s32 4294967295, %s905_s29   ;;  %s726_s30 = sadd.s32 4294967294, %s905_s29   ;;  %s905_s29 = sphi %s957_s29, %s1160_s29   ;;  %s901_s28 = sphi %s955_s28, %s1159_s28   ;;  %s897_s27 = sphi %s953_s27, %s1158_s27   ;;  %s893_s26 = sphi %s951_s26, %s1157_s26  }
   0x7   : > { %s976_s8 = sadd.s32 1, %s905_s29   ;;  %s181_s9 = sadd.s32 1, %s901_s28 }
   0x8   : > { %s178_s10 = ssub.s32 %s905_s29, %s976_s8  ;;  %p191_p0 = scmp.ne.s32.totalorder %s901_s28, %s897_s27 }
   0x9   : > { %p179_p1 = scmp.eq.s32.totalorder %s178_s10, 0  ;;  %p192_p2 = scmp.eq.s32.totalorder %s972_s6, 1 }
   0xa   : > { %p197_p3 = scmp.ne.s32.totalorder %s897_s27, %s893_s26  ;;  %p198_p4 = scmp.eq.s32.totalorder %s726_s30, 1 }
   0xb   : > { %s987_s11 = scalar_select %p179_p1, %s901_s28, %s181_s9  }
   0xc   : > { %p989_p5 = por %p192_p2, %p191_p0  ;;  %p993_p6 = por %p198_p4, %p197_p3 }
   0xd   : > { %p729_p7 = scmp.ge.s32.totalorder %s905_s29, 1  ;;  %p251_p8 = scmp.lt.s32.totalorder %s905_s29, 3 }
   0xf   : > { %p252_p9 = pnand %p729_p7, %p251_p8 }
  0x10   : > { %s730_s14 = sshll.u32 (!%p252_p9), %s972_s6, 4  ;;  %s284_s10 = sand.u32 (!%p252_p9), 1, %s897_s27  }
  0x11   : > { %255 = sbr.rel (%p252_p9) target bundleno = 609 (0x261), region = 48  ;;  %p291_p10 = scmp.lt.s32.totalorder (!%p252_p9), %s730_s14, 24 }
  0x12   : > { %s667_s16 = scalar_lea.hbm (!%p252_p9), %s1154_s7, %s972_s6  ;;  %s285_s17 = scalar_lea.vmem (!%p252_p9), [#allocation3], %s284_s10 }
  0x13   : > { %s669_s19 = sshll.u32 (!%p252_p9), %s285_s17, 4  ;;  %s671_s20 = sshll.u32 (!%p252_p9), %s667_s16, 4  ;;  %s670_s19 = int_to_ptr.vmem [resolvable:$true] %s669_s19  ;;  %s672_s20 = int_to_ptr.hbm [resolvable:$true] %s671_s20 }
  0x14   : > { %s659_s21 = scalar_lea.sflag (!%p252_p9), [#allocation4], %s284_s10  ;;  %s857_s22 = sshra.s32 (!%p252_p9), %s672_s20, 4  ;;  %s858_s22 = int_to_ptr.hbm [resolvable:$true] %s857_s22 }
  0x15   : > { %s863_s24 = scalar_lea.hbm (!%p252_p9), %s1154_s7, 2  ;;  %p864_p0 = scmp.lt.s32.totalorder (!%p252_p9), %s858_s22, %s1154_s7 }
  0x16   : > { %s1162_s14 = smov (!%p291_p10, %s730_s14), 24  ;;  %vm420_vm0 = vcmask 261120   ;;  %v343_v15 = vld [vmem:[%s1149_s2 + $0x40] sm:$0xff]  ;;  %v907_v17 = vmov 0   ;;  %v341_v21 = vld [vmem:[%s1149_s2 + $0x30] sm:$0xff]  ;;  %v344_v26 = vld [vmem:[%s1149_s2 + $0x48] sm:$0xff] }
  0x17   : > { %s731_s15 = sshll.u32 %s1162_s14, 3  ;;  %840 = vset.pattern.permute.xlu0 %v907_v17  ;;  %841 = vset.pattern.permute.xlu1 %v907_v17  ;;  %v342_v27 = vld [vmem:[%s1149_s2 + $0x38] sm:$0xff]  ;;  %v337_v32 = vld [vmem:[%s1149_s2 + $0x10] sm:$0xff]  ;;  %v336_v38 = vld [vmem:[%s1149_s2 + $0x8] sm:$0xff]  ;;  %vm576_vm1 = vcmask 654336   ;;  %vm640_vm2 = vcmask 1043456  }
  0x18   : > { %s1003_s18 = scalar_lea.vmem %s1147_s0, %s731_s15  ;;  %387 = vperm.xlu0 %840, %v343_v15   ;;  %842 = vset.pattern.permute.xlu2 %v907_v17  ;;  %v338_v33 = vld [vmem:[%s1149_s2 + $0x18] sm:$0xff]  ;;  %v522_v39 = vld [vmem:[%s1151_s4 + $0x30] sm:$0xff]  ;;  %v339_v40 = vld [vmem:[%s1149_s2 + $0x20] sm:$0xff]  ;;  %vm636_vm3 = vcmask 457728  }
  0x19   : > { %v315_v1 = vld [vmem:[%s1003_s18 + $0x70] sm:$0xff]  ;;  %v316_v2 = vld [vmem:[%s1003_s18 + $0x78] sm:$0xff]  ;;  %v313_v4 = vld [vmem:[%s1003_s18 + $0x60] sm:$0xff]  ;;  %377 = vperm.xlu1 %841, %v341_v21   ;;  %367 = vperm.xlu2 %842, %v339_v40  }
  0x1a   : > { %v324_v3 = vpack.c.bf16 %v316_v2, %v315_v1  ;;  %v314_v5 = vld [vmem:[%s1003_s18 + $0x68] sm:$0xff]  ;;  %v311_v9 = vld [vmem:[%s1003_s18 + $0x50] sm:$0xff]  ;;  %v312_v10 = vld [vmem:[%s1003_s18 + $0x58] sm:$0xff] }
  0x1b   : > { %v323_v7 = vpack.c.bf16 %v314_v5, %v313_v4  ;;  %v322_v11 = vpack.c.bf16 %v312_v10, %v311_v9  ;;  %v309_v13 = vld [vmem:[%s1003_s18 + $0x40] sm:$0xff]  ;;  %v310_v14 = vld [vmem:[%s1003_s18 + $0x48] sm:$0xff]  ;;  %v307_v19 = vld [vmem:[%s1003_s18 + $0x30] sm:$0xff] }
  0x1c   : > { %v458_v6 = vsel %vm420_vm0, %v324_v3, 0  ;;  %v321_v16 = vpack.c.bf16 %v310_v14, %v309_v13  ;;  %v308_v20 = vld [vmem:[%s1003_s18 + $0x38] sm:$0xff]  ;;  %v305_v24 = vld [vmem:[%s1003_s18 + $0x20] sm:$0xff]  ;;  %v306_v25 = vld [vmem:[%s1003_s18 + $0x28] sm:$0xff] }
  0x1d   : > { %460 = vmatpush.bf16.xpose.msra.mxu0 %v458_v6  ;;  %785 = vmatpush.bf16.xpose.msra.mxu3 %v458_v6  ;;  %v455_v8 = vsel %vm420_vm0, %v323_v7, 0  ;;  %v452_v12 = vsel %vm420_vm0, %v322_v11, 0  ;;  %v320_v22 = vpack.c.bf16 %v308_v20, %v307_v19  ;;  %v319_v28 = vpack.c.bf16 %v306_v25, %v305_v24  ;;  %v303_v30 = vld [vmem:[%s1003_s18 + $0x10] sm:$0xff]  ;;  %v304_v31 = vld [vmem:[%s1003_s18 + $0x18] sm:$0xff]  ;;  %v301_v36 = vld [vmem:[%s1003_s18] sm:$0xff] }
  0x1e   : > { %784 = vmatpush.bf16.xpose.msra.mxu2 %v458_v6  ;;  %v449_v18 = vsel %vm420_vm0, %v321_v16, 0  ;;  %v318_v34 = vpack.c.bf16 %v304_v31, %v303_v30  ;;  %v302_v37 = vld [vmem:[%s1003_s18 + $0x8] sm:$0xff]  ;;  %v518_v44 = vld [vmem:[%s1151_s4 + $0x10] sm:$0xff]  ;;  %v776_v46 = vld [vmem:[%s1148_s1] sm:$0xff]  ;;  %s859_s18 = scalar_lea.hbm %s858_s22, 1 }
  0x1f   : > { %v446_v23 = vsel %vm420_vm0, %v320_v22, 0  ;;  %v443_v29 = vsel %vm420_vm0, %v319_v28, 0  ;;  %v317_v41 = vpack.c.bf16 %v302_v37, %v301_v36  ;;  %v521_v43 = vld [vmem:[%s1151_s4 + $0x28] sm:$0xff]  ;;  %v779_v47 = vld [vmem:[%s1148_s1 + $0x18] sm:$0xff]  ;;  %v778_v48 = vld [vmem:[%s1148_s1 + $0x10] sm:$0xff]  ;;  %p860_p11 = scmp.ne.s32.totalorder %s858_s22, %s859_s18  ;;  %p865_p1 = scmp.lt.s32.totalorder %s863_s24, %s859_s18 }
  0x20   : > { %392 = vperm.xlu0 %840, %v344_v26   ;;  %v440_v35 = vsel %vm420_vm0, %v318_v34, 0  ;;  %v340_v45 = vld [vmem:[%s1149_s2 + $0x28] sm:$0xff]  ;;  %v516_v49 = vld [vmem:[%s1151_s4] sm:$0xff]  ;;  %v519_v55 = vld [vmem:[%s1151_s4 + $0x18] sm:$0xff] }
  0x21   : > { %382 = vperm.xlu1 %841, %v342_v27   ;;  %v437_v42 = vsel %vm420_vm0, %v317_v41, 0  ;;  %372 = vperm.xlu2 %842, %v340_v45   ;;  %v517_v50 = vld [vmem:[%s1151_s4 + $0x8] sm:$0xff]  ;;  %v335_v51 = vld [vmem:[%s1149_s2] sm:$0xff]  ;;  %v783_v40 = vld [vmem:[%s1150_s3 + $0x10] sm:$0xff]  ;;  %p861_p12 = pnand %p860_p11, %p989_p5  ;;  %p866_p2 = por %p865_p1, %p864_p0 }
  0x22   : > { %v520_v52 = vld [vmem:[%s1151_s4 + $0x20] sm:$0xff]  ;;  %v777_v53 = vld [vmem:[%s1148_s1 + $0x8] sm:$0xff]  ;;  %v515_v41 = vld [vmem:[%s1150_s3 + $0x18] sm:$0xf] }
  0x23   : > { %v780_v54 = vld [vmem:[%s1148_s1 + $0x20] sm:$0xff]  ;;  %p862_p13 = pneg %p861_p12 }
  0x24   : > { %v629_v56 = vld [vmem:[#allocation2] sm:$0x1] }
  0x25   : > { %461 = vmatpush.bf16.xpose.msra.mxu0 %v455_v8  ;;  %787 = vmatpush.bf16.xpose.msra.mxu3 %v455_v8  ;;  %p867_p3 = pnand %p866_p2, %p862_p13 }
  0x26   : > { %786 = vmatpush.bf16.xpose.msra.mxu2 %v455_v8 }
  0x28   : > { %357 = vperm.xlu0 %840, %v337_v32  }
  0x29   : > { %362 = vperm.xlu1 %841, %v338_v33   ;;  %347 = vperm.xlu2 %842, %v335_v51  }
  0x2d   : > { %462 = vmatpush.bf16.xpose.msra.mxu0 %v452_v12  ;;  %789 = vmatpush.bf16.xpose.msra.mxu3 %v452_v12 }
  0x2e   : > { %788 = vmatpush.bf16.xpose.msra.mxu2 %v452_v12 }
  0x30   : > { %352 = vperm.xlu0 %840, %v336_v38   ;;  %v781_v38 = vld [vmem:[%s1150_s3] sm:$0xff] }
  0x31   : > { %555 = vperm.xlu1 %841, %v522_v39   ;;  %545 = vperm.xlu2 %842, %v520_v52   ;;  %v782_v39 = vld [vmem:[%s1150_s3 + $0x8] sm:$0xff] }
  0x35   : > { %463 = vmatpush.bf16.xpose.msra.mxu0 %v449_v18  ;;  %791 = vmatpush.bf16.xpose.msra.mxu3 %v449_v18 }
  0x36   : > { %790 = vmatpush.bf16.xpose.msra.mxu2 %v449_v18 }
  0x38   : > { %550 = vperm.xlu0 %840, %v521_v43  }
  0x39   : > { %535 = vperm.xlu1 %841, %v518_v44   ;;  %540 = vperm.xlu2 %842, %v519_v55  }
  0x3d   : > { %464 = vmatpush.bf16.xpose.msra.mxu0 %v446_v23  ;;  %793 = vmatpush.bf16.xpose.msra.mxu3 %v446_v23 }
  0x3e   : > { %792 = vmatpush.bf16.xpose.msra.mxu2 %v446_v23 }
  0x40   : > { %525 = vperm.xlu0 %840, %v516_v49  }
  0x41   : > { %530 = vperm.xlu1 %841, %v517_v50   ;;  %632 = vperm.xlu2 %842, %v629_v56  }
  0x45   : > { %465 = vmatpush.bf16.xpose.msra.mxu0 %v443_v29  ;;  %795 = vmatpush.bf16.xpose.msra.mxu3 %v443_v29 }
  0x46   : > { %794 = vmatpush.bf16.xpose.msra.mxu2 %v443_v29 }
  0x4d   : > { %466 = vmatpush.bf16.xpose.msra.mxu0 %v440_v35  ;;  %797 = vmatpush.bf16.xpose.msra.mxu3 %v440_v35 }
  0x4e   : > { %796 = vmatpush.bf16.xpose.msra.mxu2 %v440_v35 }
  0x55   : > { %467 = vmatpush.bf16.xpose.msra.mxu0 %v437_v42  ;;  %799 = vmatpush.bf16.xpose.msra.mxu3 %v437_v42 }
  0x56   : > { %798 = vmatpush.bf16.xpose.msra.mxu2 %v437_v42  ;;  %v571_v42 = vunpack.c.l.b16 %v515_v41 }
  0x58   : > { %v575_v43 = vpack.c.b16 %v571_v42, %v571_v42 }
  0x5c   : > { %752 = vmatmul.msk.bf16.vlgmr.msra.gmra.mxu0 %vm420_vm0, %v776_v46  ;;  %755 = vmatmul.msk.bf16.vlgmr.msra.gmra.mxu3 %vm420_vm0, %v779_v47 }
  0x5d   : > { %754 = vmatmul.msk.bf16.vlgmr.msra.gmra.mxu2 %vm420_vm0, %v778_v48 }
  0x6c   : > { %753 = vmatmul.msk.bf16.gmra.mxu0 %vm420_vm0, %v777_v53  ;;  %756 = vmatmul.msk.bf16.gmra.mxu3 %vm420_vm0, %v780_v54 }
  0x73   : > { %v368_v0 = vpop.permute.xlu2 %367 }
  0x7b   : > { %v373_v7 = vpop.permute.xlu2 %372 }
  0x83   : > { %v348_v28 = vpop.permute.xlu2 %347 }
  0x8a   : > { %v388_v59 = vpop.permute.xlu0 %387 }
  0x8b   : > { %v378_v62 = vpop.permute.xlu1 %377  ;;  %v546_v51 = vpop.permute.xlu2 %545 }
  0x92   : > { %v393_v63 = vpop.permute.xlu0 %392 }
  0x93   : > { %v383_v4 = vpop.permute.xlu1 %382 }
  0x9a   : > { %v358_v10 = vpop.permute.xlu0 %357 }
  0x9b   : > { %v363_v21 = vpop.permute.xlu1 %362 }
  0xa2   : > { %v353_v27 = vpop.permute.xlu0 %352 }
  0xa3   : > { %v556_v49 = vpop.permute.xlu1 %555 }
  0xaa   : > { %v551_v54 = vpop.permute.xlu0 %550 }
  0xab   : > { %v536_v52 = vpop.permute.xlu1 %535 }
  0xd9   : > { %v469_v57 = vpop.f32.mrf.mxu0 }
  0xda   : > { %v470_v29 = vadd.f32 %v469_v57, %v348_v28 }
  0xdc   : > { %v494_v34 = vmax.f32 %v470_v29, 0.0 }
  0xdf   : > { %v484_v58 = vpop.f32.mrf.mxu3 }
  0xe0   : > { %v479_v1 = vpop.f32.mrf.mxu2  ;;  %v485_v12 = vadd.f32 %v484_v58, %v378_v62 }
  0xe1   : > { %v471_v61 = vpop.f32.mrf.mxu0  ;;  %v480_v16 = vadd.f32 %v479_v1, %v368_v0 }
  0xe2   : > { %v500_v20 = vmax.f32 %v485_v12, 0.0  ;;  %v472_v30 = vadd.f32 %v471_v61, %v353_v27 }
  0xe3   : > { %v498_v22 = vmax.f32 %v480_v16, 0.0 }
  0xe4   : > { %v495_v35 = vmax.f32 %v472_v30, 0.0 }
  0xe6   : > { %v504_v37 = vpack.c.bf16 %v495_v35, %v494_v34 }
  0xe7   : > { %v486_v60 = vpop.f32.mrf.mxu3 }
  0xe8   : > { %v487_v8 = vadd.f32 %v486_v60, %v383_v4  ;;  %v481_v11 = vpop.f32.mrf.mxu2 }
  0xe9   : > { %v474_v3 = vpop.f32.mrf.mxu0  ;;  %v482_v17 = vadd.f32 %v481_v11, %v373_v7  ;;  %v526_v7 = vpop.permute.xlu0 %525 }
  0xea   : > { %v501_v15 = vmax.f32 %v487_v8, 0.0  ;;  %v475_v26 = vadd.f32 %v474_v3, %v358_v10  ;;  %v531_v3 = vpop.permute.xlu1 %530 }
  0xeb   : > { %v499_v24 = vmax.f32 %v482_v17, 0.0 }
  0xec   : > { %v507_v25 = vpack.c.bf16 %v501_v15, %v500_v20  ;;  %v496_v33 = vmax.f32 %v475_v26, 0.0 }
  0xed   : > { %v506_v32 = vpack.c.bf16 %v499_v24, %v498_v22 }
  0xef   : > { %v489_v2 = vpop.f32.mrf.mxu3 }
  0xf0   : > { %v490_v5 = vadd.f32 %v489_v2, %v388_v59  ;;  %v541_v59 = vpop.permute.xlu2 %540 }
  0xf1   : > { %v476_v19 = vpop.f32.mrf.mxu0 }
  0xf2   : > { %v502_v13 = vmax.f32 %v490_v5, 0.0  ;;  %v477_v23 = vadd.f32 %v476_v19, %v363_v21 }
  0xf4   : > { %v497_v31 = vmax.f32 %v477_v23, 0.0 }
  0xf6   : > { %v505_v36 = vpack.c.bf16 %v497_v31, %v496_v33 }
  0xf7   : > { %v491_v6 = vpop.f32.mrf.mxu3 }
  0xf8   : > { %v492_v9 = vadd.f32 %v491_v6, %v393_v63  ;;  %v633_v15 = vpop.permute.xlu2 %632 }
  0xf9   : > { %v635_v16 = vperm.slane %v633_v15, 0 }
  0xfa   : > { %v503_v14 = vmax.f32 %v492_v9, 0.0 }
  0xfc   : > { %v508_v18 = vpack.c.bf16 %v503_v14, %v502_v13  ;;  %v628_v14 = vld [vmem:[%s1152_s5] sm:$0x1] }
  0xfe   : > { %592 = vmatpush.bf16.msra.mxu1 %v508_v18 }
 0x102   : > { %593 = vmatpush.bf16.msra.mxu1 %v507_v25 }
 0x106   : > { %594 = vmatpush.bf16.msra.mxu1 %v506_v32 }
 0x10a   : > { %595 = vmatpush.bf16.msra.mxu1 %v505_v36 }
 0x10e   : > { %596 = vmatpush.bf16.msra.mxu1 %v504_v37 }
 0x111   : > { %769 = vmatmul.msk.bf16.vlgmr.msra.gmra.mxu1 %vm576_vm1, %v781_v38 }
 0x121   : > { %770 = vmatmul.msk.bf16.gmra.mxu1 %vm576_vm1, %v782_v39 }
 0x131   : > { %771 = vmatmul.msk.bf16.gmra.mxu1 %vm576_vm1, %v783_v40 }
 0x141   : > { %772 = vmatmul.msk.bf16.gmra.mxu1 %vm576_vm1, %v575_v43 }
 0x18e   : > { %v598_v44 = vpop.f32.mrf.mxu1 }
 0x18f   : > { %v599_v8 = vadd.f32 %v598_v44, %v526_v7 }
 0x191   : > { %v617_v12 = vmax.f32 %v599_v8, 0.0 }
 0x196   : > { %v600_v45 = vpop.f32.mrf.mxu1 }
 0x197   : > { %v601_v4 = vadd.f32 %v600_v45, %v531_v3 }
 0x199   : > { %v618_v10 = vmax.f32 %v601_v4, 0.0 }
 0x19b   : > { %v624_v13 = vpack.c.bf16 %v618_v10, %v617_v12 }
 0x19e   : > { %v603_v46 = vpop.f32.mrf.mxu1 }
 0x19f   : > { %v604_v0 = vadd.f32 %v603_v46, %v536_v52 }
 0x1a1   : > { %v619_v9 = vmax.f32 %v604_v0, 0.0 }
 0x1a6   : > { %v605_v47 = vpop.f32.mrf.mxu1 }
 0x1a7   : > { %v606_v61 = vadd.f32 %v605_v47, %v541_v59 }
 0x1a9   : > { %v620_v5 = vmax.f32 %v606_v61, 0.0 }
 0x1ab   : > { %v625_v11 = vpack.c.bf16 %v620_v5, %v619_v9 }
 0x1ae   : > { %v608_v48 = vpop.f32.mrf.mxu1 }
 0x1af   : > { %v609_v58 = vadd.f32 %v608_v48, %v546_v51 }
 0x1b1   : > { %v621_v1 = vmax.f32 %v609_v58, 0.0 }
 0x1b6   : > { %v610_v50 = vpop.f32.mrf.mxu1 }
 0x1b7   : > { %v611_v56 = vadd.f32 %v610_v50, %v551_v54 }
 0x1b9   : > { %v622_v62 = vmax.f32 %v611_v56, 0.0 }
 0x1bb   : > { %v626_v6 = vpack.c.bf16 %v622_v62, %v621_v1 }
 0x1be   : > { %v613_v53 = vpop.f32.mrf.mxu1 }
 0x1bf   : > { %v614_v55 = vadd.f32 %v613_v53, %v556_v49 }
 0x1c1   : > { %v623_v57 = vmax.f32 %v614_v55, 0.0 }
 0x1c3   : > { %v627_v60 = vpack.c.bf16 %v623_v57, %v623_v57 }
 0x1c5   : > { %v642_v63 = vsel %vm640_vm2, %v627_v60, 0 }
 0x1c6   : > { %v615_v2 = vpop.f32.mrf.mxu1  ;;  %648 = vmatpush.bf16.msrb.mxu2 %v642_v63 }
 0x1ca   : > { %649 = vmatpush.bf16.msrb.mxu2 %v626_v6 }
 0x1ce   : > { %650 = vmatpush.bf16.msrb.mxu2 %v625_v11 }
 0x1d2   : > { %651 = vmatpush.bf16.msrb.mxu2 %v624_v13 }
 0x1d5   : > { %773 = vmatmul.msk.bf16.vlgmr.msrb.gmra.mxu2 %vm636_vm3, %v628_v14 }
 0x258   : > { %v653_v17 = vpop.f32.mrf.mxu2 }
 0x259   : > { %v654_v18 = vadd.f32 %v653_v17, %v635_v16 }
 0x25b   : > { %657 = vst [vmem:[%s285_s17] sm:$0x1] %v654_v18 }
 0x25c   : > { %870 = shalt.err (!%p867_p3)
}
 0x25d   : > { %800 = dma.vmem_to_hbm [thread:$0]  (%p989_p5), %s670_s19, 16, %s672_s20, %s659_s21  }
 0x260   : > { %v655_v19 = vpop.f32.mrf.mxu2 }
 0x261 PF: > { %p806_p4 = scmp.ge.s32.totalorder %s905_s29, 2  ;;  %s683_s9 = sand.u32 1, %s893_s26  }
 0x262   : > { %s684_s10 = scalar_lea.sflag [#allocation4], %s683_s9 }
 0x263   : > { %p803_p7 = pnand %p806_p4, %p993_p6 }
 0x265   : > { %p804_p8 = pneg %p803_p7 }
 0x267   : > { %888 = dma.done.wait (%p804_p8), %s684_s10, 16  }
 0x268   : > { %890 = vsyncadd (%p804_p8), %s684_s10, 4294967280  ;;  %p19_p9 = scmp.ge.s32.totalorder %s976_s8, 4   ;;  %s1157_s26 = smov %s897_s27 }
 0x269   : > { %s1158_s27 = smov %s901_s28  ;;  %s1159_s28 = smov %s987_s11 }
 0x26a   : > { %s1160_s29 = smov %s976_s8  ;;  %21 = sbr.rel (!%p19_p9) target bundleno = 6 (0x6), region = 83 }
 0x26f   :  { %689 = vsyncpa [#allocation4], 1 }
 0x270   :  { %691 = vsyncpa [#allocation4 + $0x1], 1 }

</bundles_post_ra>
